<compile_context>
chip_gen: v5e
topology: v5e:2x2
jax: 0.10.0
libtpu: 0.0.40
codegen_flags: <defaults>
</compile_context>

<pallas_src>
import functools
import math

import jax
import jax.numpy as jnp
import numpy as np
from jax.experimental import pallas as pl
from jax.experimental.pallas import tpu as pltpu


def _conv3x3_kernel(x_ref, w_ref, b_ref, o_ref, col_ref, *, H, W, cin, cin_pad):
    # x_ref:   (1, cin, L)  H-padded, spatially-flattened input, L=(H+2)*W+2
    # w_ref:   (cout, 9*cin_pad) packed weights (zero cols at c >= cin)
    # b_ref:   (cout, 1)
    # o_ref:   (1, cout, H*W) channel-major output block
    # col_ref: (9*cin_pad, H*W) VMEM im2col scratch (K on sublanes, HW on lanes)
    HW = H * W

    # Zero-init scratch so the cin -> cin_pad filler rows are true zeros
    # (matching the zero weight columns; avoids NaN from uninitialized VMEM).
    col_ref[...] = jnp.zeros_like(col_ref)

    x = x_ref[0]  # (cin, L)

    # Column-in-row index of every output position (hoisted out of the tap loop).
    pos = jax.lax.broadcasted_iota(jnp.int32, (cin, HW), 1) % W
    not_left = pos != 0          # mask for taps with dw == 0 (x col -1 is zero pad)
    not_right = pos != (W - 1)   # mask for taps with dw == 2 (x col W is zero pad)

    for dh in range(3):
        for dw in range(3):
            t = dh * 3 + dw
            s = dh * W + dw                       # static shift in flattened coords
            tap = x[:, s:s + HW]                  # (cin, HW)
            if dw == 0:
                tap = jnp.where(not_left, tap, 0.0)
            elif dw == 2:
                tap = jnp.where(not_right, tap, 0.0)
            # Sublane-aligned store (cin_pad is a multiple of 8).
            col_ref[pl.ds(t * cin_pad, cin), :] = tap

    # Single channel-major GEMM: (cout, K) x (K, HW) -> (cout, HW).
    acc = jnp.dot(w_ref[...], col_ref[...], preferred_element_type=jnp.float32)
    o_ref[0] = (acc + b_ref[...]).astype(o_ref.dtype)


def pack_conv_params(weight_oihw, bias):
    """One-time repack of Conv2d params (hoisted out of the forward path)."""
    cout, cin, kh, kw = weight_oihw.shape
    assert (kh, kw) == (3, 3)
    cin_pad = ((cin + 7) // 8) * 8
    w = jnp.transpose(weight_oihw, (0, 2, 3, 1))            # (cout, 3, 3, cin)
    w = w.reshape(cout, kh * kw, cin)
    w = jnp.pad(w, ((0, 0), (0, 0), (0, cin_pad - cin)))    # zero filler channels
    w = w.reshape(cout, kh * kw * cin_pad)                  # (cout, 9*cin_pad)
    b = bias.reshape(cout, 1)
    return w, b


@jax.jit
def image_embedding_forward(x_nchw, w_packed, b_packed):
    """Equivalent of ImageEmbedding.forward: Conv2d(k=3, stride=1, padding=1)."""
    N, cin, H, W = x_nchw.shape
    cout, kp = w_packed.shape
    cin_pad = kp // 9
    HW = H * W
    L = (H + 2) * W + 2

    # Tiny glue (fuses under jit): pad H by 1, flatten spatial, pad flat axis
    # by 1 on each side so every tap is a contiguous length-HW window at
    # static offset dh*W + dw (width wrap-around handled by in-kernel masks).
    xh = jnp.pad(x_nchw, ((0, 0), (0, 0), (1, 1), (0, 0)))      # (N, cin, H+2, W)
    xg = jnp.pad(xh.reshape(N, cin, (H + 2) * W), ((0, 0), (0, 0), (1, 1)))

    kernel = functools.partial(
        _conv3x3_kernel, H=H, W=W, cin=cin, cin_pad=cin_pad)

    out = pl.pallas_call(
        kernel,
        out_shape=jax.ShapeDtypeStruct((N, cout, HW), x_nchw.dtype),
        grid_spec=pltpu.PrefetchScalarGridSpec(
            num_scalar_prefetch=0,
            grid=(N,),
            in_specs=[
                pl.BlockSpec((1, cin, L), lambda n: (n, 0, 0)),
                pl.BlockSpec((cout, kp), lambda n: (0, 0)),
                pl.BlockSpec((cout, 1), lambda n: (0, 0)),
            ],
            out_specs=pl.BlockSpec((1, cout, HW), lambda n: (n, 0, 0)),
            scratch_shapes=[pltpu.VMEM((kp, HW), jnp.float32)],
        ),
        compiler_params=pltpu.CompilerParams(
            dimension_semantics=("parallel",),
        ),
    )(xg, w_packed, b_packed)

    # Channel-major kernel output -> NCHW is a free reshape (no transpose).
    return out.reshape(N, cout, H, W)


def _reference_conv(x, w, b):
    out = jax.lax.conv_general_dilated(
        x, w, window_strides=(1, 1), padding=((1, 1), (1, 1)),
        dimension_numbers=("NCHW", "OIHW", "NCHW"),
    )
    return out + b[None, :, None, None]


if __name__ == "__main__":
    in_channels, out_channels = 7, 320
    N, H, W = 2, 16, 16

    key = jax.random.PRNGKey(0)
    kx, kw_key, kb_key = jax.random.split(key, 3)

    # Deterministic, PyTorch-Conv2d-style uniform init (synthetic; no checkpoint load)
    fan_in = in_channels * 3 * 3
    bound = 1.0 / math.sqrt(fan_in)
    weight = jax.random.uniform(
        kw_key, (out_channels, in_channels, 3, 3), jnp.float32, -bound, bound)
    bias = jax.random.uniform(kb_key, (out_channels,), jnp.float32, -bound, bound)
    x = jax.random.normal(kx, (N, in_channels, H, W), jnp.float32)

    w_packed, b_packed = pack_conv_params(weight, bias)   # one-time, hoisted
    y = image_embedding_forward(x, w_packed, b_packed)
    y = jax.block_until_ready(y)

    assert y.shape == (N, out_channels, H, W)
    y_ref = _reference_conv(x, weight, bias)
    np.testing.assert_allclose(np.asarray(y), np.asarray(y_ref), atol=1e-4, rtol=1e-4)

    print("KERNEL_OK")
</pallas_src>

<mosaic_0001>
module attributes {stable_mosaic.version = 11 : i64} {
  func.func @_conv3x3_kernel(%arg0: i32, %arg1: memref<1x7x290xf32, #tpu.memory_space<vmem>>, %arg2: memref<320x72xf32, #tpu.memory_space<vmem>>, %arg3: memref<320x1xf32, #tpu.memory_space<vmem>>, %arg4: memref<1x320x256xf32, #tpu.memory_space<vmem>>, %arg5: memref<72x256xf32, #tpu.memory_space<vmem>>) attributes {dimension_semantics = [#tpu.dimension_semantics<parallel>], iteration_bounds = array<i64: 2>, scalar_prefetch = 0 : i64, scratch_operands = 1 : i64, tpu.core_type = #tpu.core_type<tc>, window_params = [{transform_indices = @transform_0, window_bounds = array<i64: 1, 7, 290>}, {pipeline_mode = #tpu.pipeline_mode<synchronous>, transform_indices = @transform_1, window_bounds = array<i64: 320, 72>}, {pipeline_mode = #tpu.pipeline_mode<synchronous>, transform_indices = @transform_2, window_bounds = array<i64: 320, 1>}, {transform_indices = @transform_3, window_bounds = array<i64: 1, 320, 256>}]} {
    %cst = arith.constant 0.000000e+00 : f32
    %0 = vector.broadcast %cst : f32 to vector<72x256xf32>
    %c0 = arith.constant 0 : index
    %c0_0 = arith.constant 0 : index
    %1 = vector.load %arg5[%c0, %c0_0] : memref<72x256xf32, #tpu.memory_space<vmem>>, vector<72x256xf32>
    tpu.vector_store %arg5[%c0, %c0_0], %0 {strides = array<i32>} : memref<72x256xf32, #tpu.memory_space<vmem>>, vector<72x256xf32>,
    %c0_1 = arith.constant 0 : index
    %c0_2 = arith.constant 0 : index
    %c0_3 = arith.constant 0 : index
    %2 = vector.load %arg1[%c0_1, %c0_2, %c0_3] : memref<1x7x290xf32, #tpu.memory_space<vmem>>, vector<1x7x290xf32>
    %3 = vector.shape_cast %2 : vector<1x7x290xf32> to vector<7x290xf32>
    %4 = tpu.iota {dimensions = array<i32: 1>} : vector<7x256xi32>
    %c16_i32 = arith.constant 16 : i32
    %c0_i32 = arith.constant 0 : i32
    %5 = arith.cmpi eq, %c16_i32, %c0_i32 : i32
    %c1_i32 = arith.constant 1 : i32
    %6 = arith.select %5, %c1_i32, %c16_i32 : i32
    %7 = vector.broadcast %6 : i32 to vector<7x256xi32>
    %8 = arith.remsi %4, %7 : vector<7x256xi32>
    %c0_i32_4 = arith.constant 0 : i32
    %9 = vector.broadcast %c0_i32_4 : i32 to vector<7x256xi32>
    %10 = arith.cmpi ne, %8, %9 : vector<7x256xi32>
    %c0_i32_5 = arith.constant 0 : i32
    %11 = vector.broadcast %c0_i32_5 : i32 to vector<7x256xi32>
    %12 = arith.cmpi slt, %8, %11 : vector<7x256xi32>
    %c0_i32_6 = arith.constant 0 : i32
    %13 = arith.cmpi slt, %6, %c0_i32_6 : i32
    %14 = vector.broadcast %13 : i1 to vector<7x256xi1>
    %15 = vector.broadcast %14 : vector<7x256xi1> to vector<7x256xi1>
    %16 = arith.xori %12, %15 : vector<7x256xi1>
    %17 = arith.andi %16, %10 : vector<7x256xi1>
    %18 = vector.broadcast %6 : i32 to vector<7x256xi32>
    %19 = arith.addi %8, %18 : vector<7x256xi32>
    %20 = arith.select %17, %19, %8 : vector<7x256xi1>, vector<7x256xi32>
    %c0_i32_7 = arith.constant 0 : i32
    %21 = vector.broadcast %c0_i32_7 : i32 to vector<7x256xi32>
    %22 = arith.cmpi ne, %20, %21 : vector<7x256xi32>
    %c15_i32 = arith.constant 15 : i32
    %23 = vector.broadcast %c15_i32 : i32 to vector<7x256xi32>
    %24 = arith.cmpi ne, %20, %23 : vector<7x256xi32>
    %25 = vector.extract_strided_slice %3 {offsets = [0, 0], sizes = [7, 256], strides = [1, 1]} : vector<7x290xf32> to vector<7x256xf32>
    %cst_8 = arith.constant 0.000000e+00 : f32
    %26 = vector.broadcast %cst_8 : f32 to vector<7x256xf32>
    %27 = arith.select %22, %25, %26 : vector<7x256xi1>, vector<7x256xf32>
    %c0_9 = arith.constant 0 : index
    %c0_10 = arith.constant 0 : index
    %28 = vector.load %arg5[%c0_9, %c0_10] : memref<72x256xf32, #tpu.memory_space<vmem>>, vector<7x256xf32>
    tpu.vector_store %arg5[%c0_9, %c0_10], %27 {strides = array<i32>} : memref<72x256xf32, #tpu.memory_space<vmem>>, vector<7x256xf32>,
    %29 = vector.extract_strided_slice %3 {offsets = [0, 1], sizes = [7, 256], strides = [1, 1]} : vector<7x290xf32> to vector<7x256xf32>
    %c8 = arith.constant 8 : index
    %c0_11 = arith.constant 0 : index
    %30 = vector.load %arg5[%c8, %c0_11] : memref<72x256xf32, #tpu.memory_space<vmem>>, vector<7x256xf32>
    tpu.vector_store %arg5[%c8, %c0_11], %29 {strides = array<i32>} : memref<72x256xf32, #tpu.memory_space<vmem>>, vector<7x256xf32>,
    %31 = vector.extract_strided_slice %3 {offsets = [0, 2], sizes = [7, 256], strides = [1, 1]} : vector<7x290xf32> to vector<7x256xf32>
    %cst_12 = arith.constant 0.000000e+00 : f32
    %32 = vector.broadcast %cst_12 : f32 to vector<7x256xf32>
    %33 = arith.select %24, %31, %32 : vector<7x256xi1>, vector<7x256xf32>
    %c16 = arith.constant 16 : index
    %c0_13 = arith.constant 0 : index
    %34 = vector.load %arg5[%c16, %c0_13] : memref<72x256xf32, #tpu.memory_space<vmem>>, vector<7x256xf32>
    tpu.vector_store %arg5[%c16, %c0_13], %33 {strides = array<i32>} : memref<72x256xf32, #tpu.memory_space<vmem>>, vector<7x256xf32>,
    %35 = vector.extract_strided_slice %3 {offsets = [0, 16], sizes = [7, 256], strides = [1, 1]} : vector<7x290xf32> to vector<7x256xf32>
    %cst_14 = arith.constant 0.000000e+00 : f32
    %36 = vector.broadcast %cst_14 : f32 to vector<7x256xf32>
    %37 = arith.select %22, %35, %36 : vector<7x256xi1>, vector<7x256xf32>
    %c24 = arith.constant 24 : index
    %c0_15 = arith.constant 0 : index
    %38 = vector.load %arg5[%c24, %c0_15] : memref<72x256xf32, #tpu.memory_space<vmem>>, vector<7x256xf32>
    tpu.vector_store %arg5[%c24, %c0_15], %37 {strides = array<i32>} : memref<72x256xf32, #tpu.memory_space<vmem>>, vector<7x256xf32>,
    %39 = vector.extract_strided_slice %3 {offsets = [0, 17], sizes = [7, 256], strides = [1, 1]} : vector<7x290xf32> to vector<7x256xf32>
    %c32 = arith.constant 32 : index
    %c0_16 = arith.constant 0 : index
    %40 = vector.load %arg5[%c32, %c0_16] : memref<72x256xf32, #tpu.memory_space<vmem>>, vector<7x256xf32>
    tpu.vector_store %arg5[%c32, %c0_16], %39 {strides = array<i32>} : memref<72x256xf32, #tpu.memory_space<vmem>>, vector<7x256xf32>,
    %41 = vector.extract_strided_slice %3 {offsets = [0, 18], sizes = [7, 256], strides = [1, 1]} : vector<7x290xf32> to vector<7x256xf32>
    %cst_17 = arith.constant 0.000000e+00 : f32
    %42 = vector.broadcast %cst_17 : f32 to vector<7x256xf32>
    %43 = arith.select %24, %41, %42 : vector<7x256xi1>, vector<7x256xf32>
    %c40 = arith.constant 40 : index
    %c0_18 = arith.constant 0 : index
    %44 = vector.load %arg5[%c40, %c0_18] : memref<72x256xf32, #tpu.memory_space<vmem>>, vector<7x256xf32>
    tpu.vector_store %arg5[%c40, %c0_18], %43 {strides = array<i32>} : memref<72x256xf32, #tpu.memory_space<vmem>>, vector<7x256xf32>,
    %45 = vector.extract_strided_slice %3 {offsets = [0, 32], sizes = [7, 256], strides = [1, 1]} : vector<7x290xf32> to vector<7x256xf32>
    %cst_19 = arith.constant 0.000000e+00 : f32
    %46 = vector.broadcast %cst_19 : f32 to vector<7x256xf32>
    %47 = arith.select %22, %45, %46 : vector<7x256xi1>, vector<7x256xf32>
    %c48 = arith.constant 48 : index
    %c0_20 = arith.constant 0 : index
    %48 = vector.load %arg5[%c48, %c0_20] : memref<72x256xf32, #tpu.memory_space<vmem>>, vector<7x256xf32>
    tpu.vector_store %arg5[%c48, %c0_20], %47 {strides = array<i32>} : memref<72x256xf32, #tpu.memory_space<vmem>>, vector<7x256xf32>,
    %49 = vector.extract_strided_slice %3 {offsets = [0, 33], sizes = [7, 256], strides = [1, 1]} : vector<7x290xf32> to vector<7x256xf32>
    %c56 = arith.constant 56 : index
    %c0_21 = arith.constant 0 : index
    %50 = vector.load %arg5[%c56, %c0_21] : memref<72x256xf32, #tpu.memory_space<vmem>>, vector<7x256xf32>
    tpu.vector_store %arg5[%c56, %c0_21], %49 {strides = array<i32>} : memref<72x256xf32, #tpu.memory_space<vmem>>, vector<7x256xf32>,
    %51 = vector.extract_strided_slice %3 {offsets = [0, 34], sizes = [7, 256], strides = [1, 1]} : vector<7x290xf32> to vector<7x256xf32>
    %cst_22 = arith.constant 0.000000e+00 : f32
    %52 = vector.broadcast %cst_22 : f32 to vector<7x256xf32>
    %53 = arith.select %24, %51, %52 : vector<7x256xi1>, vector<7x256xf32>
    %c64 = arith.constant 64 : index
    %c0_23 = arith.constant 0 : index
    %54 = vector.load %arg5[%c64, %c0_23] : memref<72x256xf32, #tpu.memory_space<vmem>>, vector<7x256xf32>
    tpu.vector_store %arg5[%c64, %c0_23], %53 {strides = array<i32>} : memref<72x256xf32, #tpu.memory_space<vmem>>, vector<7x256xf32>,
    %c0_24 = arith.constant 0 : index
    %c0_25 = arith.constant 0 : index
    %55 = vector.load %arg2[%c0_24, %c0_25] : memref<320x72xf32, #tpu.memory_space<vmem>>, vector<320x72xf32>
    %c0_26 = arith.constant 0 : index
    %c0_27 = arith.constant 0 : index
    %56 = vector.load %arg5[%c0_26, %c0_27] : memref<72x256xf32, #tpu.memory_space<vmem>>, vector<72x256xf32>
    %cst_28 = arith.constant dense<0.000000e+00> : vector<320x256xf32>
    %57 = tpu.matmul %55, %56, %cst_28 {dimension_numbers = #tpu.dot_dimension_numbers<[1], [0], [0], [1], [0, 0, 1, 1], [], []>} : vector<320x72xf32>, vector<72x256xf32>, vector<320x256xf32> -> vector<320x256xf32>
    %c0_29 = arith.constant 0 : index
    %c0_30 = arith.constant 0 : index
    %58 = vector.load %arg3[%c0_29, %c0_30] : memref<320x1xf32, #tpu.memory_space<vmem>>, vector<320x1xf32>
    %59 = vector.broadcast %58 : vector<320x1xf32> to vector<320x256xf32>
    %60 = arith.addf %57, %59 : vector<320x256xf32>
    %c0_31 = arith.constant 0 : index
    %c0_32 = arith.constant 0 : index
    %c0_33 = arith.constant 0 : index
    %61 = vector.load %arg4[%c0_31, %c0_32, %c0_33] : memref<1x320x256xf32, #tpu.memory_space<vmem>>, vector<1x320x256xf32>
    %62 = vector.shape_cast %61 : vector<1x320x256xf32> to vector<320x256xf32>
    %63 = vector.shape_cast %60 : vector<320x256xf32> to vector<1x320x256xf32>
    tpu.vector_store %arg4[%c0_31, %c0_32, %c0_33], %63 {strides = array<i32>} : memref<1x320x256xf32, #tpu.memory_space<vmem>>, vector<1x320x256xf32>,
    return
  }
  func.func @transform_0(%arg0: i32) -> (i32, i32, i32) {
    %c0_i32 = arith.constant 0 : i32
    %c0_i32_0 = arith.constant 0 : i32
    %c0_i32_1 = arith.constant 0 : i32
    return %arg0, %c0_i32, %c0_i32_0 : i32, i32, i32
  }
  func.func @transform_1(%arg0: i32) -> (i32, i32) {
    %c0_i32 = arith.constant 0 : i32
    %c0_i32_0 = arith.constant 0 : i32
    %c0_i32_1 = arith.constant 0 : i32
    return %c0_i32, %c0_i32_0 : i32, i32
  }
  func.func @transform_2(%arg0: i32) -> (i32, i32) {
    %c0_i32 = arith.constant 0 : i32
    %c0_i32_0 = arith.constant 0 : i32
    %c0_i32_1 = arith.constant 0 : i32
    return %c0_i32, %c0_i32_0 : i32, i32
  }
  func.func @transform_3(%arg0: i32) -> (i32, i32, i32) {
    %c0_i32 = arith.constant 0 : i32
    %c0_i32_0 = arith.constant 0 : i32
    %c0_i32_1 = arith.constant 0 : i32
    return %arg0, %c0_i32, %c0_i32_0 : i32, i32, i32
  }
}

</mosaic_0001>

<bundles_post_ra>
// kernel: image_embedding_forward.1
= control target key start
LH: loop header
LB: loop body
LE: loop exit
PB: predicated region body
PF: predicated region fallthrough
CT: control target
= control target key end

     0   :  { %s1340_s12 = smov 0   ;;  %s1907_s0 = inlined_call_operand.vmem [shape: f32[2,7,290], index: 0, kind: input, shape index: {}]   ;;  %s1908_s1 = inlined_call_operand.vmem [shape: f32[320,72], index: 1, kind: input, shape index: {}]   ;;  %s1909_s2 = inlined_call_operand.vmem [shape: f32[320,1], index: 2, kind: input, shape index: {}]   ;;  %s1910_s3 = inlined_call_operand.vmem [shape: f32[2,320,256], index: 3, kind: output, shape index: {}]  }
   0x1 LB: > { %s1172_s13 = sadd.s32 4294967295, %s1308_s12   ;;  %p1176_p0 = scmp.ge.s32.totalorder %s1308_s12, 1  ;;  %s1308_s12 = sphi %s1340_s12, %s13_s12  }
   0x2   : > { %p137_p1 = scmp.lt.s32.totalorder %s1308_s12, 3 }
   0x4   : > { %p138_p2 = pnand %p1176_p0, %p137_p1 }
   0x5   : > { %p161_p3 = scmp.lt.s32.totalorder (!%p138_p2), %s1172_s13, 1  ;;  %s1310_s18 = smov (!%p138_p2), 94  }
   0x6   : > { %141 = sbr.rel (%p138_p2) target bundleno = 488 (0x1e8), region = 32  ;;  %s1311_s19 = smov (!%p138_p2), 95  }
   0x7   : > { %s1312_s20 = smov (!%p138_p2), 96   ;;  %s1313_s21 = smov (!%p138_p2), 110  }
   0x8   : > { %s1314_s22 = smov (!%p138_p2), 111   ;;  %s1315_s23 = smov (!%p138_p2), 112  }
   0x9   : > { %s1316_s24 = smov (!%p138_p2), 126   ;;  %s1317_s25 = smov (!%p138_p2), 127  }
   0xb   : > { %s1920_s13 = smov (!%p161_p3, %s1172_s13), 1  ;;  %v1318_v3 = vmov 0.0   ;;  %v192_v4 = vlaneseq  ;;  %vm322_vm0 = vcmask 777216   ;;  %v403_v16 = vld [vmem:[%s1909_s2 + $0x8] sm:$0xff]  ;;  %v1319_v17 = vmov 0   ;;  %v405_v21 = vld [vmem:[%s1909_s2 + $0x18] sm:$0xff] }
   0xc   : > { %s1279_s14 = smul.u32 24, %s1920_s13  ;;  %186 = vst [vmem:[#allocation2 + $0x18] sm:$0xff] %v1318_v3  ;;  %1300 = vset.pattern.permute.xlu1 %v1319_v17  ;;  %1299 = vset.pattern.permute.xlu0 %v1319_v17  ;;  %v402_v22 = vld [vmem:[%s1909_s2] sm:$0xff]  ;;  %vm335_vm3 = vcmask 769024   ;;  %v408_v32 = vld [vmem:[%s1909_s2 + $0x30] sm:$0xff]  ;;  %v407_v33 = vld [vmem:[%s1909_s2 + $0x28] sm:$0xff] }
   0xd   : > { %171 = vst [vmem:[#allocation2] sm:$0xff] %v1318_v3  ;;  %v193_v5 = vand.u32 127, %v192_v4  ;;  %1301 = vset.pattern.permute.xlu2 %v1319_v17  ;;  %vm307_vm6 = vcmask 785408   ;;  %v411_v44 = vld [vmem:[%s1909_s2 + $0x48] sm:$0xff]  ;;  %v410_v45 = vld [vmem:[%s1909_s2 + $0x40] sm:$0xff]  ;;  %vm292_vm7 = vcmask 900096  }
   0xe   : > { %s165_s17 = scalar_lea.vmem %s1907_s0, %s1279_s14  ;;  %172 = vst [vmem:[#allocation2 + $0x38] sm:$0xff] %v1318_v3  ;;  %v414_v56 = vld [vmem:[%s1909_s2 + $0x60] sm:$0xff]  ;;  %v413_v57 = vld [vmem:[%s1909_s2 + $0x58] sm:$0xff]  ;;  %vm279_vm8 = vcmask 908288   ;;  %vm264_vm9 = vcmask 916480   ;;  %vm249_vm10 = vcmask 1031168  }
   0xf   : > { %v191_v0 = vld [vmem:[%s165_s17 + $0x10] sm:$0x7f]  ;;  %v1354_v1 = vld [vmem:[%s165_s17] sm:$0x7f]  ;;  %v1357_v2 = vld [vmem:[%s165_s17 + $0x8] sm:$0x7f] }
  0x10   : > { %333 = vrot.lane.b32.xlu1 %v191_v0, %s1310_s18  ;;  %329 = vrot.lane.b32.xlu0 %v1354_v1, %s1310_s18  ;;  %173 = vst [vmem:[#allocation2 + $0x78] sm:$0xff] %v1318_v3  ;;  %v194_v7 = vadd.s32 128, %v193_v5  ;;  %v199_v9 = vand.u32 15, %v193_v5  ;;  %v420_v10 = vld [vmem:[%s1909_s2 + $0x90] sm:$0xff]  ;;  %v419_v14 = vld [vmem:[%s1909_s2 + $0x88] sm:$0xff]  ;;  %vm236_vm11 = vcmask 1039360  }
  0x11   : > { %318 = vrot.lane.b32.xlu2 %v1357_v2, %s1311_s19  ;;  %174 = vst [vmem:[#allocation2 + $0x58] sm:$0xff] %v1318_v3  ;;  %v423_v24 = vld [vmem:[%s1909_s2 + $0xa8] sm:$0xff]  ;;  %v422_v23 = vld [vmem:[%s1909_s2 + $0xa0] sm:$0xff]  ;;  %vm642_vm12 = vcmask 588800  }
  0x12   : > { %175 = vst [vmem:[#allocation2 + $0x20] sm:$0xff] %v1318_v3  ;;  %v206_v8 = vand.u32 15, %v194_v7  ;;  %vm1382_vm2 = vcmp.ne.s32.totalorder %v199_v9, 0  ;;  %vm1398_vm4 = vcmp.ne.s32.totalorder %v199_v9, 15 }
  0x13   : > { %176 = vst [vmem:[#allocation2 + $0x8] sm:$0xff] %v1318_v3  ;;  %v223_v15 = vsel %vm1382_vm2, %v1354_v1, 0.0 }
  0x14   : > { %177 = vst [vmem:[#allocation2 + $0x70] sm:$0xff] %v1318_v3  ;;  %vm1374_vm1 = vcmp.ne.s32.totalorder %v206_v8, 0  ;;  %vm1402_vm5 = vcmp.ne.s32.totalorder %v206_v8, 15 }
  0x15   : > { %178 = vst [vmem:[#allocation2 + $0x80] sm:$0xff] %v1318_v3  ;;  %v224_v12 = vsel %vm1374_vm1, %v1357_v2, 0.0 }
  0x16   : > { %179 = vst [vmem:[#allocation2 + $0x88] sm:$0xff] %v1318_v3 }
  0x17   : > { %180 = vst [vmem:[#allocation2 + $0x40] sm:$0xff] %v1318_v3 }
  0x18   : > { %316 = vrot.lane.b32.xlu1 %v1354_v1, %s1311_s19  ;;  %331 = vrot.lane.b32.xlu0 %v1357_v2, %s1310_s18  ;;  %181 = vst [vmem:[#allocation2 + $0x50] sm:$0xff] %v1318_v3 }
  0x19   : > { %320 = vrot.lane.b32.xlu2 %v191_v0, %s1311_s19  ;;  %182 = vst [vmem:[#allocation2 + $0x28] sm:$0xff] %v1318_v3 }
  0x1a   : > { %183 = vst [vmem:[#allocation2 + $0x10] sm:$0xff] %v1318_v3 }
  0x1b   : > { %184 = vst [vmem:[#allocation2 + $0x48] sm:$0xff] %v1318_v3 }
  0x1c   : > { %185 = vst [vmem:[#allocation2 + $0x30] sm:$0xff] %v1318_v3 }
  0x1d   : > { %187 = vst [vmem:[#allocation2 + $0x68] sm:$0xff] %v1318_v3 }
  0x1e   : > { %188 = vst [vmem:[#allocation2 + $0x60] sm:$0xff] %v1318_v3  ;;  %v416_v3 = vld [vmem:[%s1909_s2 + $0x70] sm:$0xff] }
  0x1f   : > { %226 = vst [vmem:[#allocation2 + $0x38] sm:$0x7f] %v224_v12 }
  0x20   : > { %303 = vrot.lane.b32.xlu1 %v1357_v2, %s1312_s20  ;;  %301 = vrot.lane.b32.xlu0 %v1354_v1, %s1312_s20  ;;  %225 = vst [vmem:[#allocation2] sm:$0x7f] %v223_v15  ;;  %v406_v15 = vld [vmem:[%s1909_s2 + $0x20] sm:$0xff] }
  0x21   : > { %305 = vrot.lane.b32.xlu2 %v191_v0, %s1312_s20  ;;  %s1280_s20 = smul.u32 640, %s1920_s13 }
  0x28   : > { %288 = vrot.lane.b32.xlu1 %v1357_v2, %s1313_s21  ;;  %286 = vrot.lane.b32.xlu0 %v1354_v1, %s1313_s21 }
  0x29   : > { %290 = vrot.lane.b32.xlu2 %v191_v0, %s1313_s21 }
  0x30   : > { %275 = vrot.lane.b32.xlu1 %v1357_v2, %s1314_s22  ;;  %273 = vrot.lane.b32.xlu0 %v1354_v1, %s1314_s22 }
  0x31   : > { %277 = vrot.lane.b32.xlu2 %v191_v0, %s1314_s22 }
  0x38   : > { %260 = vrot.lane.b32.xlu1 %v1357_v2, %s1315_s23  ;;  %258 = vrot.lane.b32.xlu0 %v1354_v1, %s1315_s23 }
  0x39   : > { %262 = vrot.lane.b32.xlu2 %v191_v0, %s1315_s23  ;;  %s1736_s23 = scalar_lea.vmem %s1910_s3, %s1280_s20 }
  0x40   : > { %245 = vrot.lane.b32.xlu1 %v1357_v2, %s1316_s24  ;;  %243 = vrot.lane.b32.xlu0 %v1354_v1, %s1316_s24 }
  0x41   : > { %247 = vrot.lane.b32.xlu2 %v191_v0, %s1316_s24 }
  0x48   : > { %232 = vrot.lane.b32.xlu1 %v1357_v2, %s1317_s25  ;;  %230 = vrot.lane.b32.xlu0 %v1354_v1, %s1317_s25  ;;  %v404_v1 = vld [vmem:[%s1909_s2 + $0x10] sm:$0xff]  ;;  %v417_v2 = vld [vmem:[%s1909_s2 + $0x78] sm:$0xff] }
  0x49   : > { %234 = vrot.lane.b32.xlu2 %v191_v0, %s1317_s25 }
  0x50   : > { %449 = vperm.xlu1 %1300, %v403_v16   ;;  %444 = vperm.xlu0 %1299, %v402_v22  }
  0x51   : > { %454 = vperm.xlu2 %1301, %v404_v1   ;;  %v349_v1 = vld [vmem:[%s1908_s1 + $0x28] sm:$0xff] }
  0x58   : > { %459 = vperm.xlu1 %1300, %v405_v21   ;;  %469 = vperm.xlu0 %1299, %v407_v33  }
  0x59   : > { %464 = vperm.xlu2 %1301, %v406_v15   ;;  %v439_v15 = vld [vmem:[%s1909_s2 + $0x128] sm:$0xff] }
  0x60   : > { %474 = vperm.xlu1 %1300, %v408_v32   ;;  %484 = vperm.xlu0 %1299, %v410_v45   ;;  %v345_v45 = vld [vmem:[%s1908_s1 + $0x8] sm:$0xff] }
  0x68   : > { %489 = vperm.xlu1 %1300, %v411_v44   ;;  %499 = vperm.xlu0 %1299, %v413_v57   ;;  %v425_v44 = vld [vmem:[%s1909_s2 + $0xb8] sm:$0xff]  ;;  %v424_v57 = vld [vmem:[%s1909_s2 + $0xb0] sm:$0xff] }
  0x6b   : > { %v319_v6 = vpop.permute.xlu2 %318 }
  0x70   : > { %504 = vperm.xlu1 %1300, %v414_v56   ;;  %514 = vperm.xlu0 %1299, %v416_v3   ;;  %v367_v56 = vld [vmem:[%s1908_s1 + $0xb8] sm:$0xff]  ;;  %v430_v3 = vld [vmem:[%s1909_s2 + $0xe0] sm:$0xff] }
  0x73   : > { %v321_v11 = vpop.permute.xlu2 %320 }
  0x74   : > { %v324_v13 = vsel %vm322_vm0, %v319_v6, %v321_v11 }
  0x75   : > { %328 = vst [vmem:[#allocation2 + $0x18] sm:$0x7f] %v324_v13 }
  0x78   : > { %519 = vperm.xlu1 %1300, %v417_v2   ;;  %529 = vperm.xlu0 %1299, %v419_v14   ;;  %v369_v2 = vld [vmem:[%s1908_s1 + $0xc8] sm:$0xff] }
  0x79   : > { %v373_v14 = vld [vmem:[%s1908_s1 + $0xe8] sm:$0xff] }
  0x7b   : > { %v306_v20 = vpop.permute.xlu2 %305 }
  0x7c   : > { %v399_v46 = vld [vmem:[#allocation2 + $0x18] sm:$0xff] }
  0x80   : > { %534 = vperm.xlu1 %1300, %v420_v10   ;;  %544 = vperm.xlu0 %1299, %v422_v23   ;;  %v353_v10 = vld [vmem:[%s1908_s1 + $0x48] sm:$0xff] }
  0x82   : > { %v334_v18 = vpop.permute.xlu1 %333  ;;  %v330_v19 = vpop.permute.xlu0 %329 }
  0x83   : > { %v291_v34 = vpop.permute.xlu2 %290 }
  0x88   : > { %549 = vperm.xlu1 %1300, %v423_v24   ;;  %559 = vperm.xlu0 %1299, %v425_v44  }
  0x8a   : > { %v317_v25 = vpop.permute.xlu1 %316  ;;  %v332_v26 = vpop.permute.xlu0 %331 }
  0x8b   : > { %v323_v27 = vsel %vm322_vm0, %v317_v25, %v319_v6  ;;  %v336_v28 = vsel %vm335_vm3, %v330_v19, %v332_v26  ;;  %v337_v29 = vsel %vm335_vm3, %v332_v26, %v334_v18  ;;  %v278_v47 = vpop.permute.xlu2 %277 }
  0x8c   : > { %327 = vst [vmem:[#allocation2 + $0x30] sm:$0x7f] %v323_v27  ;;  %v340_v30 = vsel %vm1398_vm4, %v336_v28, 0.0  ;;  %v341_v31 = vsel %vm1402_vm5, %v337_v29, 0.0  ;;  %v409_v27 = vld [vmem:[%s1909_s2 + $0x38] sm:$0xff] }
  0x8d   : > { %342 = vst [vmem:[#allocation2 + $0x68] sm:$0x7f] %v340_v30  ;;  %479 = vperm.xlu2 %1301, %v409_v27  }
  0x8e   : > { %343 = vst [vmem:[#allocation2 + $0x60] sm:$0x7f] %v341_v31 }
  0x92   : > { %v304_v35 = vpop.permute.xlu1 %303  ;;  %v302_v36 = vpop.permute.xlu0 %301 }
  0x93   : > { %v309_v37 = vsel %vm307_vm6, %v304_v35, %v306_v20  ;;  %v308_v38 = vsel %vm307_vm6, %v302_v36, %v304_v35  ;;  %v398_v43 = vld [vmem:[#allocation2 + $0x30] sm:$0xff]  ;;  %v263_v63 = vpop.permute.xlu2 %262  ;;  %v426_v35 = vld [vmem:[%s1909_s2 + $0xc0] sm:$0xff] }
  0x94   : > { %v313_v39 = vsel %vm1374_vm1, %v309_v37, 0.0  ;;  %v312_v40 = vsel %vm1382_vm2, %v308_v38, 0.0  ;;  %v400_v41 = vld [vmem:[#allocation2 + $0x68] sm:$0xff]  ;;  %564 = vperm.xlu1 %1300, %v426_v35   ;;  %v385_v37 = vld [vmem:[#allocation2 + $0x38] sm:$0xff] }
  0x95   : > { %315 = vst [vmem:[#allocation2 + $0x48] sm:$0x7f] %v313_v39  ;;  %770 = vmatpush.msra.mxu0 %v400_v41  ;;  %1261 = vmatpush.msra.mxu2 %v400_v41  ;;  %v401_v42 = vld [vmem:[#allocation2 + $0x60] sm:$0xff] }
  0x96   : > { %314 = vst [vmem:[#allocation2 + $0x10] sm:$0x7f] %v312_v40  ;;  %907 = vmatpush.msra.mxu1 %v401_v42  ;;  %1270 = vmatpush.msra.mxu3 %v401_v42  ;;  %v384_v39 = vld [vmem:[#allocation2] sm:$0xff]  ;;  %v415_v42 = vld [vmem:[%s1909_s2 + $0x68] sm:$0xff] }
  0x97   : > { %771 = vmatpush.msra.mxu0 %v398_v43  ;;  %1262 = vmatpush.msra.mxu2 %v398_v43  ;;  %v344_v40 = vld [vmem:[%s1908_s1] sm:$0xff]  ;;  %v429_v43 = vld [vmem:[%s1909_s2 + $0xd8] sm:$0xff] }
  0x98   : > { %908 = vmatpush.msra.mxu1 %v399_v46  ;;  %1271 = vmatpush.msra.mxu3 %v399_v46  ;;  %v364_v41 = vld [vmem:[%s1908_s1 + $0xa0] sm:$0xff]  ;;  %v365_v46 = vld [vmem:[%s1908_s1 + $0xa8] sm:$0xff] }
  0x9a   : > { %v289_v48 = vpop.permute.xlu1 %288  ;;  %v287_v49 = vpop.permute.xlu0 %286 }
  0x9b   : > { %v294_v50 = vsel %vm292_vm7, %v289_v48, %v291_v34  ;;  %v293_v51 = vsel %vm292_vm7, %v287_v49, %v289_v48  ;;  %v248_v13 = vpop.permute.xlu2 %247  ;;  %v412_v34 = vld [vmem:[%s1909_s2 + $0x50] sm:$0xff] }
  0x9c   : > { %v298_v52 = vsel %vm1402_vm5, %v294_v50, 0.0  ;;  %v297_v53 = vsel %vm1398_vm4, %v293_v51, 0.0  ;;  %v397_v54 = vld [vmem:[#allocation2 + $0x48] sm:$0xff]  ;;  %494 = vperm.xlu2 %1301, %v412_v34   ;;  %579 = vperm.xlu1 %1300, %v429_v43   ;;  %v432_v48 = vld [vmem:[%s1909_s2 + $0xf0] sm:$0xff] }
  0x9d   : > { %300 = vst [vmem:[#allocation2 + $0x28] sm:$0x7f] %v298_v52  ;;  %v396_v55 = vld [vmem:[#allocation2 + $0x10] sm:$0xff]  ;;  %909 = vmatpush.msra.mxu1 %v397_v54  ;;  %1272 = vmatpush.msra.mxu3 %v397_v54  ;;  %v421_v52 = vld [vmem:[%s1909_s2 + $0x98] sm:$0xff]  ;;  %v431_v54 = vld [vmem:[%s1909_s2 + $0xe8] sm:$0xff] }
  0x9e   : > { %299 = vst [vmem:[#allocation2 + $0x50] sm:$0x7f] %v297_v53  ;;  %772 = vmatpush.msra.mxu0 %v396_v55  ;;  %1263 = vmatpush.msra.mxu2 %v396_v55  ;;  %v428_v49 = vld [vmem:[%s1909_s2 + $0xd0] sm:$0xff]  ;;  %v435_v53 = vld [vmem:[%s1909_s2 + $0x108] sm:$0xff]  ;;  %v347_v55 = vld [vmem:[%s1908_s1 + $0x18] sm:$0xff] }
  0x9f   : > { %574 = vperm.xlu0 %1299, %v428_v49   ;;  %v346_v50 = vld [vmem:[%s1908_s1 + $0x10] sm:$0xff]  ;;  %v377_v34 = vld [vmem:[%s1908_s1 + $0x108] sm:$0xff] }
  0xa0   : > { %v366_v51 = vld [vmem:[%s1908_s1 + $0xb0] sm:$0xff] }
  0xa2   : > { %v276_v58 = vpop.permute.xlu1 %275  ;;  %v274_v59 = vpop.permute.xlu0 %273 }
  0xa3   : > { %v281_v60 = vsel %vm279_vm8, %v276_v58, %v278_v47  ;;  %v280_v61 = vsel %vm279_vm8, %v274_v59, %v276_v58  ;;  %v235_v26 = vpop.permute.xlu2 %234  ;;  %v418_v47 = vld [vmem:[%s1909_s2 + $0x80] sm:$0xff] }
  0xa4   : > { %285 = vst [vmem:[#allocation2 + $0x40] sm:$0x7f] %v281_v60  ;;  %v395_v62 = vld [vmem:[#allocation2 + $0x28] sm:$0xff]  ;;  %509 = vperm.xlu2 %1301, %v415_v42   ;;  %594 = vperm.xlu1 %1300, %v432_v48   ;;  %v438_v58 = vld [vmem:[%s1909_s2 + $0x120] sm:$0xff]  ;;  %v379_v42 = vld [vmem:[%s1908_s1 + $0x118] sm:$0xff] }
  0xa5   : > { %284 = vst [vmem:[#allocation2 + $0x88] sm:$0x7f] %v280_v61  ;;  %v394_v0 = vld [vmem:[#allocation2 + $0x50] sm:$0xff]  ;;  %910 = vmatpush.msra.mxu1 %v395_v62  ;;  %1273 = vmatpush.msra.mxu3 %v395_v62  ;;  %v434_v59 = vld [vmem:[%s1909_s2 + $0x100] sm:$0xff]  ;;  %v427_v62 = vld [vmem:[%s1909_s2 + $0xc8] sm:$0xff] }
  0xa6   : > { %773 = vmatpush.msra.mxu0 %v394_v0  ;;  %1264 = vmatpush.msra.mxu2 %v394_v0  ;;  %v348_v60 = vld [vmem:[%s1908_s1 + $0x20] sm:$0xff]  ;;  %v437_v0 = vld [vmem:[%s1909_s2 + $0x118] sm:$0xff] }
  0xa7   : > { %589 = vperm.xlu0 %1299, %v431_v54   ;;  %v368_v61 = vld [vmem:[%s1908_s1 + $0xc0] sm:$0xff] }
  0xaa   : > { %v261_v4 = vpop.permute.xlu1 %260  ;;  %v259_v5 = vpop.permute.xlu0 %258 }
  0xab   : > { %v266_v6 = vsel %vm264_vm9, %v261_v4, %v263_v63  ;;  %v265_v7 = vsel %vm264_vm9, %v259_v5, %v261_v4  ;;  %v393_v8 = vld [vmem:[#allocation2 + $0x40] sm:$0xff]  ;;  %v441_v63 = vld [vmem:[%s1909_s2 + $0x138] sm:$0xff]  ;;  %v440_v4 = vld [vmem:[%s1909_s2 + $0x130] sm:$0xff] }
  0xac   : > { %v270_v9 = vsel %vm1374_vm1, %v266_v6, 0.0  ;;  %v269_v11 = vsel %vm1382_vm2, %v265_v7, 0.0  ;;  %v392_v12 = vld [vmem:[#allocation2 + $0x88] sm:$0xff]  ;;  %911 = vmatpush.msra.mxu1 %v393_v8  ;;  %1274 = vmatpush.msra.mxu3 %v393_v8  ;;  %v350_v5 = vld [vmem:[%s1908_s1 + $0x30] sm:$0xff]  ;;  %v433_v7 = vld [vmem:[%s1909_s2 + $0xf8] sm:$0xff] }
  0xad   : > { %272 = vst [vmem:[#allocation2 + $0x80] sm:$0x7f] %v270_v9  ;;  %774 = vmatpush.msra.mxu0 %v392_v12  ;;  %1265 = vmatpush.msra.mxu2 %v392_v12  ;;  %v370_v6 = vld [vmem:[%s1908_s1 + $0xd0] sm:$0xff]  ;;  %v351_v8 = vld [vmem:[%s1908_s1 + $0x38] sm:$0xff]  ;;  %v352_v12 = vld [vmem:[%s1908_s1 + $0x40] sm:$0xff] }
  0xae   : > { %271 = vst [vmem:[#allocation2 + $0x70] sm:$0x7f] %v269_v11  ;;  %524 = vperm.xlu2 %1301, %v418_v47   ;;  %609 = vperm.xlu1 %1300, %v435_v53   ;;  %v371_v9 = vld [vmem:[%s1908_s1 + $0xd8] sm:$0xff]  ;;  %v436_v11 = vld [vmem:[%s1909_s2 + $0x110] sm:$0xff]  ;;  %v380_v47 = vld [vmem:[%s1908_s1 + $0x120] sm:$0xff] }
  0xaf   : > { %604 = vperm.xlu0 %1299, %v434_v59   ;;  %v361_v59 = vld [vmem:[%s1908_s1 + $0x88] sm:$0xff] }
  0xb2   : > { %v246_v16 = vpop.permute.xlu1 %245  ;;  %v244_v17 = vpop.permute.xlu0 %243 }
  0xb3   : > { %v251_v18 = vsel %vm249_vm10, %v246_v16, %v248_v13  ;;  %v250_v19 = vsel %vm249_vm10, %v244_v17, %v246_v16  ;;  %v372_v13 = vld [vmem:[%s1908_s1 + $0xe0] sm:$0xff] }
  0xb4   : > { %v255_v20 = vsel %vm1402_vm5, %v251_v18, 0.0  ;;  %v254_v21 = vsel %vm1398_vm4, %v250_v19, 0.0  ;;  %v391_v22 = vld [vmem:[#allocation2 + $0x80] sm:$0xff]  ;;  %v1642_v18 = vpop.permute.xlu2 %454  ;;  %v354_v19 = vld [vmem:[%s1908_s1 + $0x50] sm:$0xff] }
  0xb5   : > { %257 = vst [vmem:[#allocation2 + $0x8] sm:$0x7f] %v255_v20  ;;  %v390_v25 = vld [vmem:[#allocation2 + $0x70] sm:$0xff]  ;;  %912 = vmatpush.msra.mxu1 %v391_v22  ;;  %1275 = vmatpush.msra.mxu3 %v391_v22 }
  0xb6   : > { %256 = vst [vmem:[#allocation2 + $0x20] sm:$0x7f] %v254_v21  ;;  %775 = vmatpush.msra.mxu0 %v390_v25  ;;  %1266 = vmatpush.msra.mxu2 %v390_v25  ;;  %v374_v20 = vld [vmem:[%s1908_s1 + $0xf0] sm:$0xff]  ;;  %v355_v25 = vld [vmem:[%s1908_s1 + $0x58] sm:$0xff] }
  0xb7   : > { %539 = vperm.xlu2 %1301, %v421_v52   ;;  %624 = vperm.xlu1 %1300, %v438_v58  }
  0xb8   : > { %619 = vperm.xlu0 %1299, %v437_v0  }
  0xba   : > { %v233_v28 = vpop.permute.xlu1 %232  ;;  %v231_v29 = vpop.permute.xlu0 %230 }
  0xbb   : > { %v238_v30 = vsel %vm236_vm11, %v233_v28, %v235_v26  ;;  %v237_v31 = vsel %vm236_vm11, %v231_v29, %v233_v28  ;;  %v375_v26 = vld [vmem:[%s1908_s1 + $0xf8] sm:$0xff]  ;;  %v356_v28 = vld [vmem:[%s1908_s1 + $0x60] sm:$0xff] }
  0xbc   : > { %242 = vst [vmem:[#allocation2 + $0x58] sm:$0x7f] %v238_v30  ;;  %v389_v32 = vld [vmem:[#allocation2 + $0x8] sm:$0xff]  ;;  %v1664_v27 = vpop.permute.xlu2 %464  ;;  %v376_v29 = vld [vmem:[%s1908_s1 + $0x100] sm:$0xff] }
  0xbd   : > { %241 = vst [vmem:[#allocation2 + $0x78] sm:$0x7f] %v237_v31  ;;  %v388_v33 = vld [vmem:[#allocation2 + $0x20] sm:$0xff]  ;;  %913 = vmatpush.msra.mxu1 %v389_v32  ;;  %1276 = vmatpush.msra.mxu3 %v389_v32 }
  0xbe   : > { %776 = vmatpush.msra.mxu0 %v388_v33  ;;  %1267 = vmatpush.msra.mxu2 %v388_v33  ;;  %v357_v33 = vld [vmem:[%s1908_s1 + $0x68] sm:$0xff] }
  0xbf   : > { %554 = vperm.xlu2 %1301, %v424_v57   ;;  %639 = vperm.xlu1 %1300, %v441_v63  }
  0xc0   : > { %634 = vperm.xlu0 %1299, %v440_v4  }
  0xc2   : > { %v1634_v16 = vpop.permute.xlu1 %449  ;;  %v1636_v17 = vpop.permute.xlu0 %444 }
  0xc3   : > { %v387_v36 = vld [vmem:[#allocation2 + $0x58] sm:$0xff] }
  0xc4   : > { %v386_v38 = vld [vmem:[#allocation2 + $0x78] sm:$0xff]  ;;  %914 = vmatpush.msra.mxu1 %v387_v36  ;;  %1277 = vmatpush.msra.mxu3 %v387_v36 }
  0xc5   : > { %777 = vmatpush.msra.mxu0 %v386_v38  ;;  %1268 = vmatpush.msra.mxu2 %v386_v38  ;;  %v378_v38 = vld [vmem:[%s1908_s1 + $0x110] sm:$0xff] }
  0xc6   : > { %915 = vmatpush.msra.mxu1 %v385_v37  ;;  %1278 = vmatpush.msra.mxu3 %v385_v37  ;;  %v358_v37 = vld [vmem:[%s1908_s1 + $0x70] sm:$0xff] }
  0xc7   : > { %778 = vmatpush.msra.mxu0 %v384_v39  ;;  %1269 = vmatpush.msra.mxu2 %v384_v39 }
  0xc8   : > { %1179 = vmatmul.msk.f32.vlgmr.msra.gmra.mxu0 %vm642_vm12, %v344_v40  ;;  %1199 = vmatmul.msk.f32.vlgmr.msra.gmra.mxu2 %vm642_vm12, %v364_v41 }
  0xc9   : > { %1219 = vmatmul.msk.f32.vlgmr.msra.gmra.mxu1 %vm642_vm12, %v344_v40  ;;  %1239 = vmatmul.msk.f32.vlgmr.msra.gmra.mxu3 %vm642_vm12, %v364_v41  ;;  %v359_v41 = vld [vmem:[%s1908_s1 + $0x78] sm:$0xff] }
  0xca   : > { %569 = vperm.xlu2 %1301, %v427_v62   ;;  %v1650_v21 = vpop.permute.xlu1 %459  ;;  %v1652_v22 = vpop.permute.xlu0 %469 }
  0xd0   : > { %1180 = vmatmul.msk.f32.gmra.mxu0 %vm642_vm12, %v345_v45  ;;  %1200 = vmatmul.msk.f32.gmra.mxu2 %vm642_vm12, %v365_v46 }
  0xd1   : > { %1220 = vmatmul.msk.f32.gmra.mxu1 %vm642_vm12, %v345_v45  ;;  %1240 = vmatmul.msk.f32.gmra.mxu3 %vm642_vm12, %v365_v46  ;;  %v360_v46 = vld [vmem:[%s1908_s1 + $0x80] sm:$0xff] }
  0xd2   : > { %584 = vperm.xlu2 %1301, %v430_v3   ;;  %v1670_v24 = vpop.permute.xlu1 %474  ;;  %v1672_v23 = vpop.permute.xlu0 %484 }
  0xd8   : > { %1181 = vmatmul.msk.f32.gmra.mxu0 %vm642_vm12, %v346_v50  ;;  %1201 = vmatmul.msk.f32.gmra.mxu2 %vm642_vm12, %v366_v51 }
  0xd9   : > { %1221 = vmatmul.msk.f32.gmra.mxu1 %vm642_vm12, %v346_v50  ;;  %1241 = vmatmul.msk.f32.gmra.mxu3 %vm642_vm12, %v366_v51 }
  0xda   : > { %599 = vperm.xlu2 %1301, %v433_v7   ;;  %v1686_v31 = vpop.permute.xlu1 %489  ;;  %v1688_v32 = vpop.permute.xlu0 %499  ;;  %v362_v7 = vld [vmem:[%s1908_s1 + $0x90] sm:$0xff] }
  0xe0   : > { %1182 = vmatmul.msk.f32.gmra.mxu0 %vm642_vm12, %v347_v55  ;;  %1202 = vmatmul.msk.f32.gmra.mxu2 %vm642_vm12, %v367_v56 }
  0xe1   : > { %1222 = vmatmul.msk.f32.gmra.mxu1 %vm642_vm12, %v347_v55  ;;  %1242 = vmatmul.msk.f32.gmra.mxu3 %vm642_vm12, %v367_v56 }
  0xe2   : > { %614 = vperm.xlu2 %1301, %v436_v11   ;;  %v1702_v36 = vpop.permute.xlu1 %504  ;;  %v1710_v39 = vpop.permute.xlu0 %514 }
  0xe7   : > { %v1680_v30 = vpop.permute.xlu2 %479 }
  0xe8   : > { %1183 = vmatmul.msk.f32.gmra.mxu0 %vm642_vm12, %v348_v60  ;;  %1203 = vmatmul.msk.f32.gmra.mxu2 %vm642_vm12, %v368_v61 }
  0xe9   : > { %1223 = vmatmul.msk.f32.gmra.mxu1 %vm642_vm12, %v348_v60  ;;  %1243 = vmatmul.msk.f32.gmra.mxu3 %vm642_vm12, %v368_v61  ;;  %v381_v60 = vld [vmem:[%s1908_s1 + $0x128] sm:$0xff] }
  0xea   : > { %629 = vperm.xlu2 %1301, %v439_v15   ;;  %v1724_v43 = vpop.permute.xlu1 %519  ;;  %v1726_v44 = vpop.permute.xlu0 %529 }
  0xf0   : > { %1184 = vmatmul.msk.f32.gmra.mxu0 %vm642_vm12, %v349_v1  ;;  %1204 = vmatmul.msk.f32.gmra.mxu2 %vm642_vm12, %v369_v2 }
  0xf1   : > { %1224 = vmatmul.msk.f32.gmra.mxu1 %vm642_vm12, %v349_v1  ;;  %1244 = vmatmul.msk.f32.gmra.mxu3 %vm642_vm12, %v369_v2 }
  0xf2   : > { %v1751_v52 = vpop.permute.xlu1 %534  ;;  %v545_v53 = vpop.permute.xlu0 %544 }
  0xf6   : > { %v1700_v35 = vpop.permute.xlu2 %494 }
  0xf8   : > { %1185 = vmatmul.msk.f32.gmra.mxu0 %vm642_vm12, %v350_v5  ;;  %1205 = vmatmul.msk.f32.gmra.mxu2 %vm642_vm12, %v370_v6 }
  0xf9   : > { %1225 = vmatmul.msk.f32.gmra.mxu1 %vm642_vm12, %v350_v5  ;;  %1245 = vmatmul.msk.f32.gmra.mxu3 %vm642_vm12, %v370_v6 }
  0xfa   : > { %v550_v1 = vpop.permute.xlu1 %549 }
  0xfe   : > { %v1716_v40 = vpop.permute.xlu2 %509 }
 0x100   : > { %1186 = vmatmul.msk.f32.gmra.mxu0 %vm642_vm12, %v351_v8  ;;  %1206 = vmatmul.msk.f32.gmra.mxu2 %vm642_vm12, %v371_v9 }
 0x101   : > { %1226 = vmatmul.msk.f32.gmra.mxu1 %vm642_vm12, %v351_v8  ;;  %1246 = vmatmul.msk.f32.gmra.mxu3 %vm642_vm12, %v371_v9  ;;  %v382_v8 = vld [vmem:[%s1908_s1 + $0x130] sm:$0xff] }
 0x108   : > { %1187 = vmatmul.msk.f32.gmra.mxu0 %vm642_vm12, %v352_v12  ;;  %1207 = vmatmul.msk.f32.gmra.mxu2 %vm642_vm12, %v372_v13  ;;  %v1744_v48 = vpop.permute.xlu2 %524 }
 0x109   : > { %1227 = vmatmul.msk.f32.gmra.mxu1 %vm642_vm12, %v352_v12  ;;  %1247 = vmatmul.msk.f32.gmra.mxu3 %vm642_vm12, %v372_v13 }
 0x110   : > { %1188 = vmatmul.msk.f32.gmra.mxu0 %vm642_vm12, %v353_v10  ;;  %1208 = vmatmul.msk.f32.gmra.mxu2 %vm642_vm12, %v373_v14 }
 0x111   : > { %1228 = vmatmul.msk.f32.gmra.mxu1 %vm642_vm12, %v353_v10  ;;  %1248 = vmatmul.msk.f32.gmra.mxu3 %vm642_vm12, %v373_v14  ;;  %v1766_v0 = vpop.permute.xlu2 %539 }
 0x118   : > { %1189 = vmatmul.msk.f32.gmra.mxu0 %vm642_vm12, %v354_v19  ;;  %1209 = vmatmul.msk.f32.gmra.mxu2 %vm642_vm12, %v374_v20 }
 0x119   : > { %1229 = vmatmul.msk.f32.gmra.mxu1 %vm642_vm12, %v354_v19  ;;  %1249 = vmatmul.msk.f32.gmra.mxu3 %vm642_vm12, %v374_v20  ;;  %v555_v13 = vpop.permute.xlu2 %554  ;;  %v383_v19 = vld [vmem:[%s1908_s1 + $0x138] sm:$0xff] }
 0x120   : > { %1190 = vmatmul.msk.f32.gmra.mxu0 %vm642_vm12, %v355_v25  ;;  %1210 = vmatmul.msk.f32.gmra.mxu2 %vm642_vm12, %v375_v26 }
 0x121   : > { %1230 = vmatmul.msk.f32.gmra.mxu1 %vm642_vm12, %v355_v25  ;;  %1250 = vmatmul.msk.f32.gmra.mxu3 %vm642_vm12, %v375_v26 }
 0x128   : > { %1191 = vmatmul.msk.f32.gmra.mxu0 %vm642_vm12, %v356_v28  ;;  %1211 = vmatmul.msk.f32.gmra.mxu2 %vm642_vm12, %v376_v29 }
 0x129   : > { %1231 = vmatmul.msk.f32.gmra.mxu1 %vm642_vm12, %v356_v28  ;;  %1251 = vmatmul.msk.f32.gmra.mxu3 %vm642_vm12, %v376_v29  ;;  %v560_v28 = vpop.permute.xlu0 %559 }
 0x130   : > { %1192 = vmatmul.msk.f32.gmra.mxu0 %vm642_vm12, %v357_v33  ;;  %1212 = vmatmul.msk.f32.gmra.mxu2 %vm642_vm12, %v377_v34 }
 0x131   : > { %1232 = vmatmul.msk.f32.gmra.mxu1 %vm642_vm12, %v357_v33  ;;  %1252 = vmatmul.msk.f32.gmra.mxu3 %vm642_vm12, %v377_v34 }
 0x138   : > { %1193 = vmatmul.msk.f32.gmra.mxu0 %vm642_vm12, %v358_v37  ;;  %1213 = vmatmul.msk.f32.gmra.mxu2 %vm642_vm12, %v378_v38 }
 0x139   : > { %1233 = vmatmul.msk.f32.gmra.mxu1 %vm642_vm12, %v358_v37  ;;  %1253 = vmatmul.msk.f32.gmra.mxu3 %vm642_vm12, %v378_v38 }
 0x140   : > { %1194 = vmatmul.msk.f32.gmra.mxu0 %vm642_vm12, %v359_v41  ;;  %1214 = vmatmul.msk.f32.gmra.mxu2 %vm642_vm12, %v379_v42 }
 0x141   : > { %1234 = vmatmul.msk.f32.gmra.mxu1 %vm642_vm12, %v359_v41  ;;  %1254 = vmatmul.msk.f32.gmra.mxu3 %vm642_vm12, %v379_v42 }
 0x145   : > { %v780_v45 = vpop.f32.mrf.mxu0 }
 0x146   : > { %v781_v49 = vadd.f32 %v780_v45, %v1636_v17  ;;  %v917_v50 = vpop.f32.mrf.mxu1  ;;  %v565_v45 = vpop.permute.xlu1 %564 }
 0x147   : > { %v918_v51 = vadd.f32 %v917_v50, %v1636_v17 }
 0x148   : > { %1037 = vst [vmem:[%s1736_s23] sm:$0xff] %v781_v49  ;;  %1195 = vmatmul.msk.f32.gmra.mxu0 %vm642_vm12, %v360_v46  ;;  %1215 = vmatmul.msk.f32.gmra.mxu2 %vm642_vm12, %v380_v47 }
 0x149   : > { %1038 = vst [vmem:[%s1736_s23 + $0x8] sm:$0xff] %v918_v51  ;;  %1235 = vmatmul.msk.f32.gmra.mxu1 %vm642_vm12, %v360_v46  ;;  %1255 = vmatmul.msk.f32.gmra.mxu3 %vm642_vm12, %v380_v47 }
 0x14b   : > { %v840_v54 = vpop.f32.mrf.mxu2 }
 0x14c   : > { %v977_v55 = vpop.f32.mrf.mxu3  ;;  %v841_v56 = vadd.f32 %v840_v54, %v545_v53 }
 0x14d   : > { %v978_v57 = vadd.f32 %v977_v55, %v545_v53  ;;  %v783_v58 = vpop.f32.mrf.mxu0 }
 0x14e   : > { %1077 = vst [vmem:[%s1736_s23 + $0x140] sm:$0xff] %v841_v56  ;;  %v784_v61 = vadd.f32 %v783_v58, %v1634_v16  ;;  %v920_v62 = vpop.f32.mrf.mxu1 }
 0x14f   : > { %1078 = vst [vmem:[%s1736_s23 + $0x148] sm:$0xff] %v978_v57  ;;  %v921_v63 = vadd.f32 %v920_v62, %v1634_v16 }
 0x150   : > { %1039 = vst [vmem:[%s1736_s23 + $0x10] sm:$0xff] %v784_v61  ;;  %1196 = vmatmul.msk.f32.gmra.mxu0 %vm642_vm12, %v361_v59  ;;  %1216 = vmatmul.msk.f32.gmra.mxu2 %vm642_vm12, %v381_v60 }
 0x151   : > { %1040 = vst [vmem:[%s1736_s23 + $0x18] sm:$0xff] %v921_v63  ;;  %1236 = vmatmul.msk.f32.gmra.mxu1 %vm642_vm12, %v361_v59  ;;  %1256 = vmatmul.msk.f32.gmra.mxu3 %vm642_vm12, %v381_v60 }
 0x153   : > { %v843_v2 = vpop.f32.mrf.mxu2 }
 0x154   : > { %v844_v3 = vadd.f32 %v843_v2, %v550_v1  ;;  %v980_v4 = vpop.f32.mrf.mxu3 }
 0x155   : > { %v981_v5 = vadd.f32 %v980_v4, %v550_v1  ;;  %v786_v6 = vpop.f32.mrf.mxu0 }
 0x156   : > { %1079 = vst [vmem:[%s1736_s23 + $0x150] sm:$0xff] %v844_v3  ;;  %v787_v9 = vadd.f32 %v786_v6, %v1642_v18  ;;  %v923_v11 = vpop.f32.mrf.mxu1 }
 0x157   : > { %1080 = vst [vmem:[%s1736_s23 + $0x158] sm:$0xff] %v981_v5  ;;  %v924_v12 = vadd.f32 %v923_v11, %v1642_v18  ;;  %v363_v18 = vld [vmem:[%s1908_s1 + $0x98] sm:$0xff] }
 0x158   : > { %1041 = vst [vmem:[%s1736_s23 + $0x20] sm:$0xff] %v787_v9  ;;  %1197 = vmatmul.msk.f32.gmra.mxu0 %vm642_vm12, %v362_v7  ;;  %1217 = vmatmul.msk.f32.gmra.mxu2 %vm642_vm12, %v382_v8 }
 0x159   : > { %1042 = vst [vmem:[%s1736_s23 + $0x28] sm:$0xff] %v924_v12  ;;  %1237 = vmatmul.msk.f32.gmra.mxu1 %vm642_vm12, %v362_v7  ;;  %1257 = vmatmul.msk.f32.gmra.mxu3 %vm642_vm12, %v382_v8 }
 0x15b   : > { %v846_v15 = vpop.f32.mrf.mxu2 }
 0x15c   : > { %v983_v10 = vpop.f32.mrf.mxu3  ;;  %v847_v14 = vadd.f32 %v846_v15, %v555_v13 }
 0x15d   : > { %v984_v16 = vadd.f32 %v983_v10, %v555_v13  ;;  %v789_v17 = vpop.f32.mrf.mxu0 }
 0x15e   : > { %1081 = vst [vmem:[%s1736_s23 + $0x160] sm:$0xff] %v847_v14  ;;  %v790_v20 = vadd.f32 %v789_v17, %v1650_v21  ;;  %v926_v25 = vpop.f32.mrf.mxu1 }
 0x15f   : > { %1082 = vst [vmem:[%s1736_s23 + $0x168] sm:$0xff] %v984_v16  ;;  %v927_v26 = vadd.f32 %v926_v25, %v1650_v21 }
 0x160   : > { %1043 = vst [vmem:[%s1736_s23 + $0x30] sm:$0xff] %v790_v20  ;;  %1198 = vmatmul.msk.f32.gmra.mxu0 %vm642_vm12, %v363_v18  ;;  %1218 = vmatmul.msk.f32.gmra.mxu2 %vm642_vm12, %v383_v19 }
 0x161   : > { %1044 = vst [vmem:[%s1736_s23 + $0x38] sm:$0xff] %v927_v26  ;;  %1238 = vmatmul.msk.f32.gmra.mxu1 %vm642_vm12, %v363_v18  ;;  %1258 = vmatmul.msk.f32.gmra.mxu3 %vm642_vm12, %v383_v19 }
 0x163   : > { %v849_v29 = vpop.f32.mrf.mxu2 }
 0x164   : > { %v986_v33 = vpop.f32.mrf.mxu3  ;;  %v850_v34 = vadd.f32 %v849_v29, %v560_v28 }
 0x165   : > { %v987_v37 = vadd.f32 %v986_v33, %v560_v28  ;;  %v792_v21 = vpop.f32.mrf.mxu0 }
 0x166   : > { %1083 = vst [vmem:[%s1736_s23 + $0x170] sm:$0xff] %v850_v34  ;;  %v793_v38 = vadd.f32 %v792_v21, %v1664_v27  ;;  %v929_v41 = vpop.f32.mrf.mxu1 }
 0x167   : > { %1084 = vst [vmem:[%s1736_s23 + $0x178] sm:$0xff] %v987_v37  ;;  %v930_v42 = vadd.f32 %v929_v41, %v1664_v27  ;;  %v570_v27 = vpop.permute.xlu2 %569 }
 0x168   : > { %1045 = vst [vmem:[%s1736_s23 + $0x40] sm:$0xff] %v793_v38 }
 0x169   : > { %1046 = vst [vmem:[%s1736_s23 + $0x48] sm:$0xff] %v930_v42 }
 0x16b   : > { %v852_v46 = vpop.f32.mrf.mxu2 }
 0x16c   : > { %v989_v47 = vpop.f32.mrf.mxu3  ;;  %v853_v49 = vadd.f32 %v852_v46, %v565_v45 }
 0x16d   : > { %v990_v50 = vadd.f32 %v989_v47, %v565_v45  ;;  %v795_v51 = vpop.f32.mrf.mxu0 }
 0x16e   : > { %1085 = vst [vmem:[%s1736_s23 + $0x180] sm:$0xff] %v853_v49  ;;  %v796_v53 = vadd.f32 %v795_v51, %v1652_v22  ;;  %v932_v54 = vpop.f32.mrf.mxu1 }
 0x16f   : > { %1086 = vst [vmem:[%s1736_s23 + $0x188] sm:$0xff] %v990_v50  ;;  %v933_v55 = vadd.f32 %v932_v54, %v1652_v22  ;;  %v575_v22 = vpop.permute.xlu0 %574 }
 0x170   : > { %1047 = vst [vmem:[%s1736_s23 + $0x50] sm:$0xff] %v796_v53 }
 0x171   : > { %1048 = vst [vmem:[%s1736_s23 + $0x58] sm:$0xff] %v933_v55 }
 0x173   : > { %v855_v56 = vpop.f32.mrf.mxu2 }
 0x174   : > { %v992_v57 = vpop.f32.mrf.mxu3  ;;  %v856_v58 = vadd.f32 %v855_v56, %v570_v27 }
 0x175   : > { %v993_v59 = vadd.f32 %v992_v57, %v570_v27  ;;  %v798_v60 = vpop.f32.mrf.mxu0 }
 0x176   : > { %1087 = vst [vmem:[%s1736_s23 + $0x190] sm:$0xff] %v856_v58  ;;  %v799_v61 = vadd.f32 %v798_v60, %v1670_v24  ;;  %v935_v62 = vpop.f32.mrf.mxu1 }
 0x177   : > { %1088 = vst [vmem:[%s1736_s23 + $0x198] sm:$0xff] %v993_v59  ;;  %v936_v63 = vadd.f32 %v935_v62, %v1670_v24  ;;  %v580_v24 = vpop.permute.xlu1 %579 }
 0x178   : > { %1049 = vst [vmem:[%s1736_s23 + $0x60] sm:$0xff] %v799_v61 }
 0x179   : > { %1050 = vst [vmem:[%s1736_s23 + $0x68] sm:$0xff] %v936_v63 }
 0x17b   : > { %v858_v1 = vpop.f32.mrf.mxu2 }
 0x17c   : > { %v995_v2 = vpop.f32.mrf.mxu3  ;;  %v859_v3 = vadd.f32 %v858_v1, %v575_v22 }
 0x17d   : > { %v996_v4 = vadd.f32 %v995_v2, %v575_v22  ;;  %v801_v5 = vpop.f32.mrf.mxu0 }
 0x17e   : > { %1089 = vst [vmem:[%s1736_s23 + $0x1a0] sm:$0xff] %v859_v3  ;;  %v802_v6 = vadd.f32 %v801_v5, %v1680_v30  ;;  %v938_v7 = vpop.f32.mrf.mxu1 }
 0x17f   : > { %1090 = vst [vmem:[%s1736_s23 + $0x1a8] sm:$0xff] %v996_v4  ;;  %v939_v8 = vadd.f32 %v938_v7, %v1680_v30  ;;  %v585_v30 = vpop.permute.xlu2 %584 }
 0x180   : > { %1051 = vst [vmem:[%s1736_s23 + $0x70] sm:$0xff] %v802_v6 }
 0x181   : > { %1052 = vst [vmem:[%s1736_s23 + $0x78] sm:$0xff] %v939_v8 }
 0x183   : > { %v861_v9 = vpop.f32.mrf.mxu2 }
 0x184   : > { %v998_v11 = vpop.f32.mrf.mxu3  ;;  %v862_v12 = vadd.f32 %v861_v9, %v580_v24 }
 0x185   : > { %v999_v13 = vadd.f32 %v998_v11, %v580_v24  ;;  %v804_v15 = vpop.f32.mrf.mxu0 }
 0x186   : > { %1091 = vst [vmem:[%s1736_s23 + $0x1b0] sm:$0xff] %v862_v12  ;;  %v805_v10 = vadd.f32 %v804_v15, %v1672_v23  ;;  %v941_v14 = vpop.f32.mrf.mxu1 }
 0x187   : > { %1092 = vst [vmem:[%s1736_s23 + $0x1b8] sm:$0xff] %v999_v13  ;;  %v942_v16 = vadd.f32 %v941_v14, %v1672_v23  ;;  %v590_v23 = vpop.permute.xlu0 %589 }
 0x188   : > { %1053 = vst [vmem:[%s1736_s23 + $0x80] sm:$0xff] %v805_v10 }
 0x189   : > { %1054 = vst [vmem:[%s1736_s23 + $0x88] sm:$0xff] %v942_v16 }
 0x18b   : > { %v864_v17 = vpop.f32.mrf.mxu2 }
 0x18c   : > { %v865_v18 = vadd.f32 %v864_v17, %v585_v30  ;;  %v1001_v19 = vpop.f32.mrf.mxu3 }
 0x18d   : > { %v1002_v20 = vadd.f32 %v1001_v19, %v585_v30  ;;  %v807_v25 = vpop.f32.mrf.mxu0 }
 0x18e   : > { %1093 = vst [vmem:[%s1736_s23 + $0x1c0] sm:$0xff] %v865_v18  ;;  %v808_v26 = vadd.f32 %v807_v25, %v1686_v31  ;;  %v944_v28 = vpop.f32.mrf.mxu1 }
 0x18f   : > { %1094 = vst [vmem:[%s1736_s23 + $0x1c8] sm:$0xff] %v1002_v20  ;;  %v945_v29 = vadd.f32 %v944_v28, %v1686_v31  ;;  %v595_v31 = vpop.permute.xlu1 %594 }
 0x190   : > { %1055 = vst [vmem:[%s1736_s23 + $0x90] sm:$0xff] %v808_v26 }
 0x191   : > { %1056 = vst [vmem:[%s1736_s23 + $0x98] sm:$0xff] %v945_v29 }
 0x193   : > { %v867_v33 = vpop.f32.mrf.mxu2 }
 0x194   : > { %v868_v34 = vadd.f32 %v867_v33, %v590_v23  ;;  %v1004_v37 = vpop.f32.mrf.mxu3 }
 0x195   : > { %v1005_v21 = vadd.f32 %v1004_v37, %v590_v23  ;;  %v810_v38 = vpop.f32.mrf.mxu0 }
 0x196   : > { %1095 = vst [vmem:[%s1736_s23 + $0x1d0] sm:$0xff] %v868_v34  ;;  %v811_v41 = vadd.f32 %v810_v38, %v1700_v35  ;;  %v947_v42 = vpop.f32.mrf.mxu1 }
 0x197   : > { %1096 = vst [vmem:[%s1736_s23 + $0x1d8] sm:$0xff] %v1005_v21  ;;  %v948_v45 = vadd.f32 %v947_v42, %v1700_v35  ;;  %v600_v35 = vpop.permute.xlu2 %599 }
 0x198   : > { %1057 = vst [vmem:[%s1736_s23 + $0xa0] sm:$0xff] %v811_v41 }
 0x199   : > { %1058 = vst [vmem:[%s1736_s23 + $0xa8] sm:$0xff] %v948_v45 }
 0x19b   : > { %v870_v46 = vpop.f32.mrf.mxu2 }
 0x19c   : > { %v871_v47 = vadd.f32 %v870_v46, %v595_v31  ;;  %v1007_v49 = vpop.f32.mrf.mxu3 }
 0x19d   : > { %v1008_v50 = vadd.f32 %v1007_v49, %v595_v31  ;;  %v813_v51 = vpop.f32.mrf.mxu0 }
 0x19e   : > { %1097 = vst [vmem:[%s1736_s23 + $0x1e0] sm:$0xff] %v871_v47  ;;  %v814_v53 = vadd.f32 %v813_v51, %v1688_v32  ;;  %v950_v54 = vpop.f32.mrf.mxu1 }
 0x19f   : > { %1098 = vst [vmem:[%s1736_s23 + $0x1e8] sm:$0xff] %v1008_v50  ;;  %v951_v55 = vadd.f32 %v950_v54, %v1688_v32  ;;  %v605_v32 = vpop.permute.xlu0 %604 }
 0x1a0   : > { %1059 = vst [vmem:[%s1736_s23 + $0xb0] sm:$0xff] %v814_v53 }
 0x1a1   : > { %1060 = vst [vmem:[%s1736_s23 + $0xb8] sm:$0xff] %v951_v55 }
 0x1a3   : > { %v873_v27 = vpop.f32.mrf.mxu2 }
 0x1a4   : > { %v874_v56 = vadd.f32 %v873_v27, %v600_v35  ;;  %v1010_v57 = vpop.f32.mrf.mxu3 }
 0x1a5   : > { %v1011_v58 = vadd.f32 %v1010_v57, %v600_v35  ;;  %v816_v59 = vpop.f32.mrf.mxu0 }
 0x1a6   : > { %1099 = vst [vmem:[%s1736_s23 + $0x1f0] sm:$0xff] %v874_v56  ;;  %v817_v60 = vadd.f32 %v816_v59, %v1702_v36  ;;  %v953_v61 = vpop.f32.mrf.mxu1 }
 0x1a7   : > { %1100 = vst [vmem:[%s1736_s23 + $0x1f8] sm:$0xff] %v1011_v58  ;;  %v954_v62 = vadd.f32 %v953_v61, %v1702_v36  ;;  %v610_v36 = vpop.permute.xlu1 %609 }
 0x1a8   : > { %1061 = vst [vmem:[%s1736_s23 + $0xc0] sm:$0xff] %v817_v60 }
 0x1a9   : > { %1062 = vst [vmem:[%s1736_s23 + $0xc8] sm:$0xff] %v954_v62 }
 0x1ab   : > { %v876_v63 = vpop.f32.mrf.mxu2 }
 0x1ac   : > { %v877_v22 = vadd.f32 %v876_v63, %v605_v32  ;;  %v1013_v1 = vpop.f32.mrf.mxu3 }
 0x1ad   : > { %v1014_v2 = vadd.f32 %v1013_v1, %v605_v32  ;;  %v819_v3 = vpop.f32.mrf.mxu0 }
 0x1ae   : > { %1101 = vst [vmem:[%s1736_s23 + $0x200] sm:$0xff] %v877_v22  ;;  %v820_v4 = vadd.f32 %v819_v3, %v1716_v40  ;;  %v956_v5 = vpop.f32.mrf.mxu1 }
 0x1af   : > { %1102 = vst [vmem:[%s1736_s23 + $0x208] sm:$0xff] %v1014_v2  ;;  %v957_v6 = vadd.f32 %v956_v5, %v1716_v40  ;;  %v615_v40 = vpop.permute.xlu2 %614 }
 0x1b0   : > { %1063 = vst [vmem:[%s1736_s23 + $0xd0] sm:$0xff] %v820_v4 }
 0x1b1   : > { %1064 = vst [vmem:[%s1736_s23 + $0xd8] sm:$0xff] %v957_v6 }
 0x1b3   : > { %v879_v7 = vpop.f32.mrf.mxu2 }
 0x1b4   : > { %v880_v8 = vadd.f32 %v879_v7, %v610_v36  ;;  %v1016_v24 = vpop.f32.mrf.mxu3 }
 0x1b5   : > { %v1017_v9 = vadd.f32 %v1016_v24, %v610_v36  ;;  %v822_v11 = vpop.f32.mrf.mxu0 }
 0x1b6   : > { %1103 = vst [vmem:[%s1736_s23 + $0x210] sm:$0xff] %v880_v8  ;;  %v823_v12 = vadd.f32 %v822_v11, %v1710_v39  ;;  %v959_v13 = vpop.f32.mrf.mxu1 }
 0x1b7   : > { %1104 = vst [vmem:[%s1736_s23 + $0x218] sm:$0xff] %v1017_v9  ;;  %v960_v15 = vadd.f32 %v959_v13, %v1710_v39  ;;  %v620_v39 = vpop.permute.xlu0 %619 }
 0x1b8   : > { %1065 = vst [vmem:[%s1736_s23 + $0xe0] sm:$0xff] %v823_v12 }
 0x1b9   : > { %1066 = vst [vmem:[%s1736_s23 + $0xe8] sm:$0xff] %v960_v15 }
 0x1bb   : > { %v882_v10 = vpop.f32.mrf.mxu2 }
 0x1bc   : > { %v883_v14 = vadd.f32 %v882_v10, %v615_v40  ;;  %v1019_v16 = vpop.f32.mrf.mxu3 }
 0x1bd   : > { %v1020_v30 = vadd.f32 %v1019_v16, %v615_v40  ;;  %v825_v17 = vpop.f32.mrf.mxu0 }
 0x1be   : > { %1105 = vst [vmem:[%s1736_s23 + $0x220] sm:$0xff] %v883_v14  ;;  %v826_v18 = vadd.f32 %v825_v17, %v1724_v43  ;;  %v962_v19 = vpop.f32.mrf.mxu1 }
 0x1bf   : > { %1106 = vst [vmem:[%s1736_s23 + $0x228] sm:$0xff] %v1020_v30  ;;  %v963_v20 = vadd.f32 %v962_v19, %v1724_v43  ;;  %v625_v43 = vpop.permute.xlu1 %624 }
 0x1c0   : > { %1067 = vst [vmem:[%s1736_s23 + $0xf0] sm:$0xff] %v826_v18 }
 0x1c1   : > { %1068 = vst [vmem:[%s1736_s23 + $0xf8] sm:$0xff] %v963_v20 }
 0x1c3   : > { %v885_v25 = vpop.f32.mrf.mxu2 }
 0x1c4   : > { %v886_v26 = vadd.f32 %v885_v25, %v620_v39  ;;  %v1022_v28 = vpop.f32.mrf.mxu3 }
 0x1c5   : > { %v1023_v29 = vadd.f32 %v1022_v28, %v620_v39  ;;  %v828_v23 = vpop.f32.mrf.mxu0 }
 0x1c6   : > { %1107 = vst [vmem:[%s1736_s23 + $0x230] sm:$0xff] %v886_v26  ;;  %v829_v33 = vadd.f32 %v828_v23, %v1744_v48  ;;  %v965_v34 = vpop.f32.mrf.mxu1 }
 0x1c7   : > { %1108 = vst [vmem:[%s1736_s23 + $0x238] sm:$0xff] %v1023_v29  ;;  %v966_v37 = vadd.f32 %v965_v34, %v1744_v48  ;;  %v630_v48 = vpop.permute.xlu2 %629 }
 0x1c8   : > { %1069 = vst [vmem:[%s1736_s23 + $0x100] sm:$0xff] %v829_v33 }
 0x1c9   : > { %1070 = vst [vmem:[%s1736_s23 + $0x108] sm:$0xff] %v966_v37 }
 0x1cb   : > { %v888_v21 = vpop.f32.mrf.mxu2 }
 0x1cc   : > { %v889_v38 = vadd.f32 %v888_v21, %v625_v43  ;;  %v1025_v41 = vpop.f32.mrf.mxu3 }
 0x1cd   : > { %v1026_v42 = vadd.f32 %v1025_v41, %v625_v43  ;;  %v831_v45 = vpop.f32.mrf.mxu0 }
 0x1ce   : > { %1109 = vst [vmem:[%s1736_s23 + $0x240] sm:$0xff] %v889_v38  ;;  %v832_v31 = vadd.f32 %v831_v45, %v1726_v44  ;;  %v968_v46 = vpop.f32.mrf.mxu1 }
 0x1cf   : > { %1110 = vst [vmem:[%s1736_s23 + $0x248] sm:$0xff] %v1026_v42  ;;  %v969_v47 = vadd.f32 %v968_v46, %v1726_v44  ;;  %v635_v44 = vpop.permute.xlu0 %634 }
 0x1d0   : > { %1071 = vst [vmem:[%s1736_s23 + $0x110] sm:$0xff] %v832_v31 }
 0x1d1   : > { %1072 = vst [vmem:[%s1736_s23 + $0x118] sm:$0xff] %v969_v47 }
 0x1d3   : > { %v891_v49 = vpop.f32.mrf.mxu2 }
 0x1d4   : > { %v892_v50 = vadd.f32 %v891_v49, %v630_v48  ;;  %v1028_v51 = vpop.f32.mrf.mxu3 }
 0x1d5   : > { %v1029_v53 = vadd.f32 %v1028_v51, %v630_v48  ;;  %v834_v54 = vpop.f32.mrf.mxu0 }
 0x1d6   : > { %1111 = vst [vmem:[%s1736_s23 + $0x250] sm:$0xff] %v892_v50  ;;  %v835_v55 = vadd.f32 %v834_v54, %v1751_v52  ;;  %v971_v35 = vpop.f32.mrf.mxu1 }
 0x1d7   : > { %1112 = vst [vmem:[%s1736_s23 + $0x258] sm:$0xff] %v1029_v53  ;;  %v972_v27 = vadd.f32 %v971_v35, %v1751_v52  ;;  %v640_v52 = vpop.permute.xlu1 %639 }
 0x1d8   : > { %1073 = vst [vmem:[%s1736_s23 + $0x120] sm:$0xff] %v835_v55 }
 0x1d9   : > { %1074 = vst [vmem:[%s1736_s23 + $0x128] sm:$0xff] %v972_v27 }
 0x1db   : > { %v894_v56 = vpop.f32.mrf.mxu2 }
 0x1dc   : > { %v895_v57 = vadd.f32 %v894_v56, %v635_v44  ;;  %v1031_v58 = vpop.f32.mrf.mxu3 }
 0x1dd   : > { %v1032_v59 = vadd.f32 %v1031_v58, %v635_v44  ;;  %v837_v60 = vpop.f32.mrf.mxu0 }
 0x1de   : > { %1113 = vst [vmem:[%s1736_s23 + $0x260] sm:$0xff] %v895_v57  ;;  %v838_v61 = vadd.f32 %v837_v60, %v1766_v0  ;;  %v974_v62 = vpop.f32.mrf.mxu1 }
 0x1df   : > { %1114 = vst [vmem:[%s1736_s23 + $0x268] sm:$0xff] %v1032_v59  ;;  %v975_v32 = vadd.f32 %v974_v62, %v1766_v0 }
 0x1e0   : > { %1075 = vst [vmem:[%s1736_s23 + $0x130] sm:$0xff] %v838_v61 }
 0x1e1   : > { %1076 = vst [vmem:[%s1736_s23 + $0x138] sm:$0xff] %v975_v32 }
 0x1e3   : > { %v897_v63 = vpop.f32.mrf.mxu2 }
 0x1e4   : > { %v898_v22 = vadd.f32 %v897_v63, %v640_v52  ;;  %v1034_v1 = vpop.f32.mrf.mxu3 }
 0x1e5   : > { %v1035_v2 = vadd.f32 %v1034_v1, %v640_v52 }
 0x1e6   : > { %1115 = vst [vmem:[%s1736_s23 + $0x270] sm:$0xff] %v898_v22 }
 0x1e7   : > { %1116 = vst [vmem:[%s1736_s23 + $0x278] sm:$0xff] %v1035_v2 }
 0x1e8 PF: > { %s13_s12 = sadd.s32 1, %s1308_s12  }
 0x1e9   : > { %p10_p4 = scmp.ge.s32.totalorder %s13_s12, 4  }
 0x1eb   :  { %12 = sbr.rel (!%p10_p4) target bundleno = 1 (0x1), region = 62 }

</bundles_post_ra>
